<compile_context>
chip_gen: v5e
topology: v5e:2x2
jax: 0.10.0
libtpu: 0.0.40
codegen_flags: <defaults>
</compile_context>

<pallas_src>
import jax
import jax.numpy as jnp
from jax.experimental import pallas as pl
from jax.experimental.pallas import tpu as pltpu


def mlp_kernel(x_ref, w23_ref, vecs_ref, o_ref):
    # x_ref:    (1, TB)      batch on lanes
    # w23_ref:  (2, 10, 10)  fc2 / fc3 weights, (out, in) layout
    # vecs_ref: (10, 6)      columns = [w1, b1, b2, b3, w4, b4 (broadcast)]
    x = x_ref[...]                       # (1, TB)

    w1 = vecs_ref[:, 0:1]                # (10, 1)
    b1 = vecs_ref[:, 1:2]                # (10, 1)
    b2 = vecs_ref[:, 2:3]                # (10, 1)
    b3 = vecs_ref[:, 3:4]                # (10, 1)
    w4 = vecs_ref[:, 4:5]                # (10, 1)
    b4 = vecs_ref[0:1, 5:6]              # (1, 1)

    def sigmoid(z):
        # Single EUP transcendental instead of exp + reciprocal.
        return 0.5 * jnp.tanh(0.5 * z) + 0.5

    # fc1 (contraction dim K=1): outer product on the VPU, not the MXU.
    h = sigmoid(w1 * x + b1)                                              # (10, TB)

    # fc2 / fc3 (10x10): keep on the MXU, streaming over the batch lanes.
    h = sigmoid(jnp.dot(w23_ref[0], h, preferred_element_type=jnp.float32) + b2)
    h = sigmoid(jnp.dot(w23_ref[1], h, preferred_element_type=jnp.float32) + b3)

    # fc4 (output dim N=1): elementwise multiply + sublane reduce -> lane-dense result.
    y = jnp.sum(w4 * h, axis=0, keepdims=True) + b4                       # (1, TB)

    o_ref[...] = y.astype(o_ref.dtype)


def pack_params(p):
    """Pack the 8 tiny parameter arrays into 2 VMEM-friendly blocks."""
    w23 = jnp.stack([p["w2"], p["w3"]], axis=0)              # (2, 10, 10)
    vecs = jnp.stack(
        [
            p["w1"].reshape(10),                             # fc1 weight (10,1)
            p["b1"].reshape(10),
            p["b2"].reshape(10),
            p["b3"].reshape(10),
            p["w4"].reshape(10),                             # fc4 weight (1,10)
            jnp.full((10,), p["b4"].reshape(())[()], jnp.float32),
        ],
        axis=1,
    ).astype(jnp.float32)                                    # (10, 6)
    return w23.astype(jnp.float32), vecs


def complex_nn_forward(x, params, *, batch_tile=512):
    """x: (B, 1) float32. params: dict in PyTorch (out, in) layout."""
    B = x.shape[0]

    # Batch tile: multiple of 128 on the lane axis, capped for small B.
    tb = int(min(batch_tile, max(128, pl.next_power_of_2(B))))
    n_tiles = pl.cdiv(B, tb)
    b_pad = tb * n_tiles

    # Layout plumbing in the wrapper: batch onto the lane axis.
    x_t = jnp.pad(x.astype(jnp.float32).T, ((0, 0), (0, b_pad - B)))  # (1, B_pad)
    w23, vecs = pack_params(params)

    out_t = pl.pallas_call(
        mlp_kernel,
        out_shape=jax.ShapeDtypeStruct((1, b_pad), jnp.float32),
        grid=(n_tiles,),
        in_specs=[
            pl.BlockSpec((1, tb), lambda i: (0, i)),          # x tile (lane-dense)
            pl.BlockSpec((2, 10, 10), lambda i: (0, 0, 0)),   # weights: VMEM-resident
            pl.BlockSpec((10, 6), lambda i: (0, 0)),          # packed vectors: resident
        ],
        out_specs=pl.BlockSpec((1, tb), lambda i: (0, i)),
        compiler_params=pltpu.CompilerParams(
            dimension_semantics=("parallel",),                # megacore sharding on v7x
        ),
    )(x_t, w23, vecs)

    return out_t[:, :B].T                                     # (B, 1)


def init_params():
    """Deterministic init mimicking PyTorch's default Linear init
    (uniform in +/- 1/sqrt(fan_in)). Weights stored as (out, in) — PyTorch layout."""
    key = jax.random.PRNGKey(0)
    ks = jax.random.split(key, 8)

    def linear(kw, kb, fan_in, fan_out):
        bound = 1.0 / jnp.sqrt(float(fan_in))
        w = jax.random.uniform(kw, (fan_out, fan_in), jnp.float32, -bound, bound)
        b = jax.random.uniform(kb, (fan_out,), jnp.float32, -bound, bound)
        return w, b

    w1, b1 = linear(ks[0], ks[1], 1, 10)
    w2, b2 = linear(ks[2], ks[3], 10, 10)
    w3, b3 = linear(ks[4], ks[5], 10, 10)
    w4, b4 = linear(ks[6], ks[7], 10, 1)
    return {"w1": w1, "b1": b1, "w2": w2, "b2": b2,
            "w3": w3, "b3": b3, "w4": w4, "b4": b4}


def reference_forward(x, p):
    h = jax.nn.sigmoid(x @ p["w1"].T + p["b1"])
    h = jax.nn.sigmoid(h @ p["w2"].T + p["b2"])
    h = jax.nn.sigmoid(h @ p["w3"].T + p["b3"])
    return h @ p["w4"].T + p["b4"]


if __name__ == "__main__":
    params = init_params()

    B = 8
    x = jax.random.normal(jax.random.PRNGKey(0), (B, 1), dtype=jnp.float32)

    out = complex_nn_forward(x, params)
    out = jax.block_until_ready(out)

    ref = reference_forward(x, params)
    assert out.shape == (B, 1), out.shape
    assert jnp.allclose(out, ref, atol=1e-5, rtol=1e-4), (out, ref)

    # Also exercise the multi-tile grid path (B > one batch tile).
    B2 = 1500
    x2 = jax.random.normal(jax.random.PRNGKey(1), (B2, 1), dtype=jnp.float32)
    out2 = jax.block_until_ready(complex_nn_forward(x2, params))
    ref2 = reference_forward(x2, params)
    assert out2.shape == (B2, 1), out2.shape
    assert jnp.allclose(out2, ref2, atol=1e-5, rtol=1e-4)

    print("KERNEL_OK")
</pallas_src>

<mosaic_0001>
module attributes {stable_mosaic.version = 11 : i64} {
  func.func @mlp_kernel(%arg0: i32, %arg1: memref<1x128xf32, #tpu.memory_space<vmem>>, %arg2: memref<2x10x10xf32, #tpu.memory_space<vmem>>, %arg3: memref<10x6xf32, #tpu.memory_space<vmem>>, %arg4: memref<1x128xf32, #tpu.memory_space<vmem>>) attributes {dimension_semantics = [#tpu.dimension_semantics<parallel>], iteration_bounds = array<i64: 1>, scalar_prefetch = 0 : i64, scratch_operands = 0 : i64, tpu.core_type = #tpu.core_type<tc>, window_params = [{transform_indices = @transform_0, window_bounds = array<i64: 1, 128>}, {pipeline_mode = #tpu.pipeline_mode<synchronous>, transform_indices = @transform_1, window_bounds = array<i64: 2, 10, 10>}, {pipeline_mode = #tpu.pipeline_mode<synchronous>, transform_indices = @transform_2, window_bounds = array<i64: 10, 6>}, {transform_indices = @transform_3, window_bounds = array<i64: 1, 128>}]} {
    %c0 = arith.constant 0 : index
    %c0_0 = arith.constant 0 : index
    %0 = vector.load %arg1[%c0, %c0_0] : memref<1x128xf32, #tpu.memory_space<vmem>>, vector<1x128xf32>
    %c0_1 = arith.constant 0 : index
    %c0_2 = arith.constant 0 : index
    %1 = vector.load %arg3[%c0_1, %c0_2] : memref<10x6xf32, #tpu.memory_space<vmem>>, vector<10x1xf32>
    %c0_3 = arith.constant 0 : index
    %c1 = arith.constant 1 : index
    %2 = vector.load %arg3[%c0_3, %c1] : memref<10x6xf32, #tpu.memory_space<vmem>>, vector<10x1xf32>
    %c0_4 = arith.constant 0 : index
    %c2 = arith.constant 2 : index
    %3 = vector.load %arg3[%c0_4, %c2] : memref<10x6xf32, #tpu.memory_space<vmem>>, vector<10x1xf32>
    %c0_5 = arith.constant 0 : index
    %c3 = arith.constant 3 : index
    %4 = vector.load %arg3[%c0_5, %c3] : memref<10x6xf32, #tpu.memory_space<vmem>>, vector<10x1xf32>
    %c0_6 = arith.constant 0 : index
    %c4 = arith.constant 4 : index
    %5 = vector.load %arg3[%c0_6, %c4] : memref<10x6xf32, #tpu.memory_space<vmem>>, vector<10x1xf32>
    %c0_7 = arith.constant 0 : index
    %c5 = arith.constant 5 : index
    %6 = vector.load %arg3[%c0_7, %c5] : memref<10x6xf32, #tpu.memory_space<vmem>>, vector<1x1xf32>
    %7 = vector.broadcast %1 : vector<10x1xf32> to vector<10x128xf32>
    %8 = vector.broadcast %0 : vector<1x128xf32> to vector<10x128xf32>
    %9 = arith.mulf %7, %8 : vector<10x128xf32>
    %10 = vector.broadcast %2 : vector<10x1xf32> to vector<10x128xf32>
    %11 = arith.addf %9, %10 : vector<10x128xf32>
    %cst = arith.constant 5.000000e-01 : f32
    %12 = vector.broadcast %cst : f32 to vector<10x128xf32>
    %13 = arith.mulf %12, %11 : vector<10x128xf32>
    %14 = math.tanh %13 : vector<10x128xf32>
    %cst_8 = arith.constant 5.000000e-01 : f32
    %15 = vector.broadcast %cst_8 : f32 to vector<10x128xf32>
    %16 = arith.mulf %15, %14 : vector<10x128xf32>
    %cst_9 = arith.constant 5.000000e-01 : f32
    %17 = vector.broadcast %cst_9 : f32 to vector<10x128xf32>
    %18 = arith.addf %16, %17 : vector<10x128xf32>
    %c0_10 = arith.constant 0 : index
    %c0_11 = arith.constant 0 : index
    %c0_12 = arith.constant 0 : index
    %19 = vector.load %arg2[%c0_10, %c0_11, %c0_12] : memref<2x10x10xf32, #tpu.memory_space<vmem>>, vector<1x10x10xf32>
    %20 = vector.shape_cast %19 : vector<1x10x10xf32> to vector<10x10xf32>
    %cst_13 = arith.constant dense<0.000000e+00> : vector<10x128xf32>
    %21 = tpu.matmul %20, %18, %cst_13 {dimension_numbers = #tpu.dot_dimension_numbers<[1], [0], [0], [1], [0, 0, 1, 1], [], []>} : vector<10x10xf32>, vector<10x128xf32>, vector<10x128xf32> -> vector<10x128xf32>
    %22 = vector.broadcast %3 : vector<10x1xf32> to vector<10x128xf32>
    %23 = arith.addf %21, %22 : vector<10x128xf32>
    %cst_14 = arith.constant 5.000000e-01 : f32
    %24 = vector.broadcast %cst_14 : f32 to vector<10x128xf32>
    %25 = arith.mulf %24, %23 : vector<10x128xf32>
    %26 = math.tanh %25 : vector<10x128xf32>
    %cst_15 = arith.constant 5.000000e-01 : f32
    %27 = vector.broadcast %cst_15 : f32 to vector<10x128xf32>
    %28 = arith.mulf %27, %26 : vector<10x128xf32>
    %cst_16 = arith.constant 5.000000e-01 : f32
    %29 = vector.broadcast %cst_16 : f32 to vector<10x128xf32>
    %30 = arith.addf %28, %29 : vector<10x128xf32>
    %c1_17 = arith.constant 1 : index
    %c0_18 = arith.constant 0 : index
    %c0_19 = arith.constant 0 : index
    %31 = vector.load %arg2[%c1_17, %c0_18, %c0_19] : memref<2x10x10xf32, #tpu.memory_space<vmem>>, vector<1x10x10xf32>
    %32 = vector.shape_cast %31 : vector<1x10x10xf32> to vector<10x10xf32>
    %cst_20 = arith.constant dense<0.000000e+00> : vector<10x128xf32>
    %33 = tpu.matmul %32, %30, %cst_20 {dimension_numbers = #tpu.dot_dimension_numbers<[1], [0], [0], [1], [0, 0, 1, 1], [], []>} : vector<10x10xf32>, vector<10x128xf32>, vector<10x128xf32> -> vector<10x128xf32>
    %34 = vector.broadcast %4 : vector<10x1xf32> to vector<10x128xf32>
    %35 = arith.addf %33, %34 : vector<10x128xf32>
    %cst_21 = arith.constant 5.000000e-01 : f32
    %36 = vector.broadcast %cst_21 : f32 to vector<10x128xf32>
    %37 = arith.mulf %36, %35 : vector<10x128xf32>
    %38 = math.tanh %37 : vector<10x128xf32>
    %cst_22 = arith.constant 5.000000e-01 : f32
    %39 = vector.broadcast %cst_22 : f32 to vector<10x128xf32>
    %40 = arith.mulf %39, %38 : vector<10x128xf32>
    %cst_23 = arith.constant 5.000000e-01 : f32
    %41 = vector.broadcast %cst_23 : f32 to vector<10x128xf32>
    %42 = arith.addf %40, %41 : vector<10x128xf32>
    %43 = vector.broadcast %5 : vector<10x1xf32> to vector<10x128xf32>
    %44 = arith.mulf %43, %42 : vector<10x128xf32>
    %cst_24 = arith.constant dense<0.000000e+00> : vector<128xf32>
    %45 = vector.multi_reduction <add>, %44, %cst_24 [0] : vector<10x128xf32> to vector<128xf32>
    %46 = vector.shape_cast %45 : vector<128xf32> to vector<1x128xf32>
    %47 = vector.broadcast %6 : vector<1x1xf32> to vector<1x128xf32>
    %48 = arith.addf %46, %47 : vector<1x128xf32>
    %c0_25 = arith.constant 0 : index
    %c0_26 = arith.constant 0 : index
    %49 = vector.load %arg4[%c0_25, %c0_26] : memref<1x128xf32, #tpu.memory_space<vmem>>, vector<1x128xf32>
    tpu.vector_store %arg4[%c0_25, %c0_26], %48 {strides = array<i32>} : memref<1x128xf32, #tpu.memory_space<vmem>>, vector<1x128xf32>,
    return
  }
  func.func @transform_0(%arg0: i32) -> (i32, i32) {
    %c0_i32 = arith.constant 0 : i32
    %c0_i32_0 = arith.constant 0 : i32
    return %c0_i32, %arg0 : i32, i32
  }
  func.func @transform_1(%arg0: i32) -> (i32, i32, i32) {
    %c0_i32 = arith.constant 0 : i32
    %c0_i32_0 = arith.constant 0 : i32
    %c0_i32_1 = arith.constant 0 : i32
    %c0_i32_2 = arith.constant 0 : i32
    return %c0_i32, %c0_i32_0, %c0_i32_1 : i32, i32, i32
  }
  func.func @transform_2(%arg0: i32) -> (i32, i32) {
    %c0_i32 = arith.constant 0 : i32
    %c0_i32_0 = arith.constant 0 : i32
    %c0_i32_1 = arith.constant 0 : i32
    return %c0_i32, %c0_i32_0 : i32, i32
  }
  func.func @transform_3(%arg0: i32) -> (i32, i32) {
    %c0_i32 = arith.constant 0 : i32
    %c0_i32_0 = arith.constant 0 : i32
    return %c0_i32, %arg0 : i32, i32
  }
}

</mosaic_0001>

<bundles_post_ra>
// kernel: tpu_custom_call.1
= control target key start
LH: loop header
LB: loop body
LE: loop exit
PB: predicated region body
PF: predicated region fallthrough
CT: control target
= control target key end

     0   :  { %v263_v1 = vmov 1   ;;  %v264_v2 = vmov 0   ;;  %s326_s0 = inlined_call_operand.vmem [shape: f32[1,128], index: 0, kind: input, shape index: {}]   ;;  %s327_s1 = inlined_call_operand.vmem [shape: f32[2,10,10], index: 1, kind: input, shape index: {}]   ;;  %s328_s2 = inlined_call_operand.vmem [shape: f32[10,6], index: 2, kind: input, shape index: {}]   ;;  %s329_s3 = inlined_call_operand.hbm [shape: f32[1,128], index: 3, kind: output, shape index: {}]  }
   0x1   :  { %v17_v0 = vld [vmem:[%s328_s2 + $0x8] sm:$0x3]  ;;  %216 = vset.pattern.permute.xlu1 %v263_v1  ;;  %215 = vset.pattern.permute.xlu0 %v264_v2 }
   0x2   :  { %8 = vsyncpa [#allocation3], 0  ;;  %39 = vperm.xlu1 %216, %v17_v0   ;;  %26 = vperm.xlu0 %215, %v17_v0   ;;  %v16_v3 = vld [vmem:[%s328_s2] sm:$0xff]  ;;  %v265_v4 = vmov 2   ;;  %vm69_vm0 = vcmask 1041408   ;;  %vm62_vm1 = vcmask 80896  }
   0x3   :  { %217 = vset.pattern.permute.xlu2 %v265_v4  ;;  %v224_v5 = vld [vmem:[%s326_s0] ss:$0 sm:$0xff]  ;;  %v53_v23 = vld [vmem:[%s327_s1 + $0x8] sm:$0x3]  ;;  %v266_v25 = vmov 3   ;;  %v267_v26 = vmov 4  }
   0x4   :  { %59 = vperm.xlu2 %217, %v17_v0   ;;  %v52_v22 = vld [vmem:[%s327_s1] sm:$0xff]  ;;  %v268_v31 = vmov 5   ;;  %v200_v42 = vld [vmem:[%s327_s1 + $0x18] sm:$0x3]  ;;  %v199_v43 = vld [vmem:[%s327_s1 + $0x10] sm:$0xff]  ;;  %s269_s1 = smov [#allocation2]  }
   0x5   :  { %v18_v30 = vld [vmem:[%s328_s2] sm:$0x1]  ;;  %s185_s26 = sshll.u32 %s269_s1, 4  ;;  %s187_s29 = sshll.u32 %s329_s3, 4  ;;  %s186_s26 = int_to_ptr.vmem [resolvable:$true] %s185_s26  ;;  %s188_s29 = int_to_ptr.hbm [resolvable:$true] %s187_s29 }
   0xa   :  { %35 = vperm.xlu1 %216, %v16_v3   ;;  %21 = vperm.xlu0 %215, %v16_v3  }
   0xc   :  { %55 = vperm.xlu2 %217, %v16_v3  }
  0x12   :  { %218 = vset.pattern.permute.xlu0 %v266_v25  ;;  %219 = vset.pattern.permute.xlu1 %v266_v25 }
  0x13   :  { %112 = vperm.xlu0 %218, %v17_v0   ;;  %108 = vperm.xlu1 %219, %v16_v3  }
  0x14   :  { %220 = vset.pattern.permute.xlu2 %v267_v26 }
  0x15   :  { %160 = vperm.xlu2 %220, %v17_v0  }
  0x1b   :  { %221 = vset.pattern.permute.xlu1 %v267_v26  ;;  %223 = vset.pattern.permute.xlu0 %v268_v31 }
  0x1c   :  { %156 = vperm.xlu1 %221, %v16_v3  }
  0x1d   :  { %222 = vset.pattern.permute.xlu2 %v268_v31 }
  0x1e   :  { %175 = vperm.xlu2 %222, %v18_v30  }
  0x5e   :  { %v60_v24 = vpop.permute.xlu2 %59 }
  0x66   :  { %v56_v27 = vpop.permute.xlu2 %55 }
  0x6f   :  { %v161_v58 = vpop.permute.xlu2 %160 }
  0x74   :  { %v40_v6 = vpop.permute.xlu1 %39  ;;  %v27_v7 = vpop.permute.xlu0 %26 }
  0x75   :  { %v33_v8 = vmul.f32 %v224_v5, %v27_v7 }
  0x77   :  { %v43_v9 = vadd.f32 %v40_v6, %v33_v8 }
  0x79   :  { %v45_v10 = vmul.f32 0.5, %v43_v9 }
  0x7b   :  { %225 = vtanh.f32 %v45_v10 }
  0x7c   :  { %v22_v11 = vpop.permute.xlu0 %21  ;;  %v36_v13 = vpop.permute.xlu1 %35 }
  0x7d   :  { %v32_v12 = vmul.f32 %v224_v5, %v22_v11  ;;  %v176_v5 = vpop.permute.xlu2 %175 }
  0x7f   :  { %v42_v14 = vadd.f32 %v36_v13, %v32_v12 }
  0x81   :  { %v226_v15 = vpop.eup %225  ;;  %v44_v16 = vmul.f32 0.5, %v42_v14 }
  0x82   :  { %v49_v17 = vmul.f32 0.5, %v226_v15 }
  0x83   :  { %227 = vtanh.f32 %v44_v16 }
  0x84   :  { %v51_v18 = vadd.f32 0.5, %v49_v17 }
  0x85   :  { %v109_v44 = vpop.permute.xlu1 %108  ;;  %v113_v48 = vpop.permute.xlu0 %112 }
  0x86   :  { %196 = vmatpush.msk.msra.mxu0 %vm69_vm0, %v51_v18  ;;  %204 = vmatpush.msk.msra.mxu2 %vm69_vm0, %v51_v18 }
  0x89   :  { %v228_v19 = vpop.eup %227 }
  0x8a   :  { %v48_v20 = vmul.f32 0.5, %v228_v19 }
  0x8c   :  { %v50_v21 = vadd.f32 0.5, %v48_v20 }
  0x8e   :  { %88 = vmatpush.msra.mxu0 %v50_v21  ;;  %205 = vmatpush.msra.mxu2 %v50_v21  ;;  %v157_v57 = vpop.permute.xlu1 %156 }
  0x8f   :  { %197 = vmatmul.msk.f32.vlgmr.msra.gmra.mxu0 %vm62_vm1, %v52_v22  ;;  %198 = vmatmul.msk.f32.vlgmr.msra.gmra.mxu2 %vm62_vm1, %v53_v23 }
 0x10c   :  { %v90_v28 = vpop.f32.mrf.mxu0 }
 0x10d   :  { %v91_v29 = vadd.f32 %v90_v28, %v56_v27 }
 0x10f   :  { %v96_v32 = vmul.f32 0.5, %v91_v29 }
 0x111   :  { %229 = vtanh.f32 %v96_v32 }
 0x112   :  { %v93_v33 = vpop.f32.mrf.mxu2 }
 0x113   :  { %v94_v34 = vadd.f32 %v93_v33, %v60_v24 }
 0x115   :  { %v97_v35 = vmul.f32 0.5, %v94_v34 }
 0x117   :  { %231 = vtanh.f32 %v97_v35  ;;  %v230_v36 = vpop.eup %229 }
 0x118   :  { %v100_v39 = vmul.f32 0.5, %v230_v36 }
 0x11a   :  { %v102_v41 = vadd.f32 0.5, %v100_v39 }
 0x11d   :  { %v232_v37 = vpop.eup %231 }
 0x11e   :  { %v101_v38 = vmul.f32 0.5, %v232_v37 }
 0x120   :  { %v103_v40 = vadd.f32 0.5, %v101_v38 }
 0x122   :  { %201 = vmatpush.msk.msra.mxu1 %vm69_vm0, %v103_v40  ;;  %206 = vmatpush.msk.msra.mxu3 %vm69_vm0, %v103_v40 }
 0x124   :  { %139 = vmatpush.msra.mxu1 %v102_v41  ;;  %207 = vmatpush.msra.mxu3 %v102_v41 }
 0x125   :  { %203 = vmatmul.msk.f32.vlgmr.msra.gmra.mxu3 %vm62_vm1, %v200_v42  ;;  %202 = vmatmul.msk.f32.vlgmr.msra.gmra.mxu1 %vm62_vm1, %v199_v43 }
 0x1a2   :  { %v141_v45 = vpop.f32.mrf.mxu1 }
 0x1a3   :  { %v142_v46 = vadd.f32 %v141_v45, %v109_v44 }
 0x1a5   :  { %v147_v47 = vmul.f32 0.5, %v142_v46 }
 0x1a7   :  { %233 = vtanh.f32 %v147_v47 }
 0x1a8   :  { %v144_v49 = vpop.f32.mrf.mxu3 }
 0x1a9   :  { %v145_v50 = vadd.f32 %v144_v49, %v113_v48 }
 0x1ab   :  { %v148_v51 = vmul.f32 0.5, %v145_v50 }
 0x1ad   :  { %v234_v52 = vpop.eup %233  ;;  %235 = vtanh.f32 %v148_v51 }
 0x1ae   :  { %v151_v53 = vmul.f32 0.5, %v234_v52 }
 0x1b0   :  { %v153_v55 = vadd.f32 0.5, %v151_v53 }
 0x1b2   :  { %v163_v60 = vmul.f32 %v157_v57, %v153_v55 }
 0x1b3   :  { %v236_v54 = vpop.eup %235 }
 0x1b4   :  { %v152_v56 = vmul.f32 0.5, %v236_v54 }
 0x1b6   :  { %v154_v59 = vadd.f32 0.5, %v152_v56 }
 0x1b8   :  { %v164_v61 = vmul.f32 %v161_v58, %v154_v59 }
 0x1ba   :  { %v165_v62 = vsel %vm69_vm0, %v164_v61, 0.0 }
 0x1bb   :  { %v166_v63 = vadd.f32 %v165_v62, %v163_v60 }
 0x1bd   :  { %v167_v0 = vrot.slane %v166_v63, 4 }
 0x1bf   :  { %v168_v1 = vadd.f32 %v167_v0, %v166_v63 }
 0x1c1   :  { %v169_v2 = vrot.slane %v168_v1, 2 }
 0x1c3   :  { %v170_v3 = vadd.f32 %v169_v2, %v168_v1 }
 0x1c5   :  { %v171_v4 = vrot.slane %v170_v3, 1 }
 0x1c7   :  { %v172_v6 = vadd.f32 %v171_v4, %v170_v3 }
 0x1c9   :  { %v178_v7 = vadd.f32 %v176_v5, %v172_v6 }
 0x1cb   :  { %179 = vst [vmem:[#allocation2] sm:$0x1] %v178_v7 }
 0x1cc   :  { %190 = dma.vmem_to_hbm [thread:$0]  %s186_s26, 16, %s188_s29, [#allocation3]  }
 0x1cd   :  { %261 = dma.done.wait [#allocation3], 16  }
 0x1ce   :  { %262 = vsyncadd [#allocation3], 4294967280 }
 0x1cf   :  { %195 = vsyncpa [#allocation3], 1 }

</bundles_post_ra>
